<compile_context>
chip_gen: v7x
topology: tpu7x:2x2x1
jax: 0.10.0
libtpu: 0.0.40
codegen_flags: <defaults>
</compile_context>

<pallas_src>
import jax
import jax.numpy as jnp
from jax.experimental import pallas as pl
from jax.experimental.pallas import tpu as pltpu

NUM_CLASSES = 10   # global `num_classes` in the original script
HIDDEN = 512
LANE = 128         # TPU vreg lane width


def _round_up(x, m):
    return ((x + m - 1) // m) * m


def mlp_kernel(x_ref, w1_ref, b1_ref, w2_ref, b2_ref, o_ref):
    # Linear 1 + ReLU  (MXU matmul, f32 accumulate)
    h = jnp.dot(x_ref[...], w1_ref[...], preferred_element_type=jnp.float32)
    h = jnp.maximum(h + b1_ref[...], 0.0)            # (bm, 512) + (1, 512)
    # Linear 2 + ReLU  (N padded to a full 128-lane tile -> unmasked stores)
    o = jnp.dot(h, w2_ref[...], preferred_element_type=jnp.float32)
    o_ref[...] = jnp.maximum(o + b2_ref[...], 0.0).astype(o_ref.dtype)


def base_nn_forward(x, w1, b1, w2, b2, *, block_m=None):
    """x: (B, input_size) f32. w1: (in, 512), w2: (512, n_cls).
    Returns (B, n_cls) f32 == out.view(-1, num_classes)."""
    B, in_size = x.shape
    hidden = w1.shape[1]
    n_cls = w2.shape[1]

    # --- wrapper-side padding to TPU-friendly shapes -------------------------
    k_pad = _round_up(in_size, LANE)             # lane-dense K (full MXU contraction)
    n_pad = _round_up(max(n_cls, LANE), LANE)    # lane-dense output (no vst.msk)
    if block_m is None:
        # Big M tiles fill the MXU and amortize the ~0.35us/step grid overhead;
        # for tiny batches just do the whole (padded) batch in one step.
        # (With large batches this yields >=2 grid steps -> both v7x TCs busy.)
        block_m = min(256, _round_up(B, 8))
    b_pad = _round_up(B, block_m)

    xp  = jnp.pad(x,  ((0, b_pad - B), (0, k_pad - in_size)))
    w1p = jnp.pad(w1, ((0, k_pad - in_size), (0, 0)))
    w2p = jnp.pad(w2, ((0, 0), (0, n_pad - n_cls)))
    b2p = jnp.pad(b2, ((0, 0), (0, n_pad - n_cls)))

    grid = (b_pad // block_m,)

    # Constant-index (resident) operands: single buffer, halves their VMEM use.
    resident = dict(pipeline_mode=pl.Buffered(1))

    flops = 2 * b_pad * (k_pad * hidden + hidden * n_pad)
    bytes_accessed = 4 * (b_pad * k_pad + k_pad * hidden + hidden
                          + hidden * n_pad + n_pad + b_pad * n_pad)
    cost = pl.CostEstimate(flops=flops, transcendentals=0,
                           bytes_accessed=bytes_accessed)

    out = pl.pallas_call(
        mlp_kernel,
        out_shape=jax.ShapeDtypeStruct((b_pad, n_pad), jnp.float32),
        grid_spec=pltpu.PrefetchScalarGridSpec(
            num_scalar_prefetch=0,
            grid=grid,
            in_specs=[
                pl.BlockSpec((block_m, k_pad), lambda i: (i, 0)),             # x tile (pipelined)
                pl.BlockSpec((k_pad, hidden), lambda i: (0, 0), **resident),  # W1 resident
                pl.BlockSpec((1, hidden),     lambda i: (0, 0), **resident),  # b1 resident
                pl.BlockSpec((hidden, n_pad), lambda i: (0, 0), **resident),  # W2 resident
                pl.BlockSpec((1, n_pad),      lambda i: (0, 0), **resident),  # b2 resident
            ],
            out_specs=pl.BlockSpec((block_m, n_pad), lambda i: (i, 0)),
        ),
        compiler_params=pltpu.CompilerParams(
            dimension_semantics=("parallel",),   # batch axis -> megacore sharding
            vmem_limit_bytes=64 << 20,           # headroom on v5e (16 MiB default scoped)
        ),
        cost_estimate=cost,
    )(xp, w1p, b1, w2p, b2p)

    # out.view(-1, num_classes): drop batch / lane padding.
    return out[:B, :n_cls]


def init_params(key, input_size, hidden, n_cls):
    """Deterministic init mimicking PyTorch nn.Linear default U(-1/sqrt(fan_in), +)."""
    k1, k2, k3, k4 = jax.random.split(key, 4)
    bound1 = 1.0 / jnp.sqrt(input_size)
    bound2 = 1.0 / jnp.sqrt(hidden)
    # stored as (in, out) so kernel computes x @ W  (== x @ W_pt.T)
    w1 = jax.random.uniform(k1, (input_size, hidden), jnp.float32, -bound1, bound1)
    b1 = jax.random.uniform(k2, (1, hidden), jnp.float32, -bound1, bound1)
    w2 = jax.random.uniform(k3, (hidden, n_cls), jnp.float32, -bound2, bound2)
    b2 = jax.random.uniform(k4, (1, n_cls), jnp.float32, -bound2, bound2)
    return w1, b1, w2, b2


if __name__ == "__main__":
    key = jax.random.PRNGKey(0)
    kx, kp = jax.random.split(key)

    batch = 8
    input_size = 32

    x = jax.random.normal(kx, (batch, input_size), jnp.float32)
    w1, b1, w2, b2 = init_params(kp, input_size, HIDDEN, NUM_CLASSES)

    out = jax.block_until_ready(base_nn_forward(x, w1, b1, w2, b2))

    # pure-JAX reference check (same math, no padding)
    ref = jnp.maximum(jnp.maximum(x @ w1 + b1, 0.0) @ w2 + b2, 0.0).reshape(-1, NUM_CLASSES)
    assert out.shape == (batch, NUM_CLASSES)
    assert jnp.allclose(out, ref, atol=1e-5, rtol=1e-5)

    print("KERNEL_OK")
</pallas_src>

<mosaic_0001>
module attributes {stable_mosaic.version = 11 : i64} {
  func.func @mlp_kernel(%arg0: i32, %arg1: memref<8x128xf32, #tpu.memory_space<vmem>>, %arg2: memref<128x512xf32, #tpu.memory_space<vmem>>, %arg3: memref<1x512xf32, #tpu.memory_space<vmem>>, %arg4: memref<512x128xf32, #tpu.memory_space<vmem>>, %arg5: memref<1x128xf32, #tpu.memory_space<vmem>>, %arg6: memref<8x128xf32, #tpu.memory_space<vmem>>) attributes {dimension_semantics = [#tpu.dimension_semantics<parallel>], iteration_bounds = array<i64: 1>, scalar_prefetch = 0 : i64, scratch_operands = 0 : i64, tpu.core_type = #tpu.core_type<tc>, window_params = [{transform_indices = @transform_0, window_bounds = array<i64: 8, 128>}, {pipeline_mode = #tpu.pipeline_mode<synchronous>, transform_indices = @transform_1, window_bounds = array<i64: 128, 512>}, {pipeline_mode = #tpu.pipeline_mode<synchronous>, transform_indices = @transform_2, window_bounds = array<i64: 1, 512>}, {pipeline_mode = #tpu.pipeline_mode<synchronous>, transform_indices = @transform_3, window_bounds = array<i64: 512, 128>}, {pipeline_mode = #tpu.pipeline_mode<synchronous>, transform_indices = @transform_4, window_bounds = array<i64: 1, 128>}, {transform_indices = @transform_5, window_bounds = array<i64: 8, 128>}]} {
    %c0 = arith.constant 0 : index
    %c0_0 = arith.constant 0 : index
    %0 = vector.load %arg1[%c0, %c0_0] : memref<8x128xf32, #tpu.memory_space<vmem>>, vector<8x128xf32>
    %c0_1 = arith.constant 0 : index
    %c0_2 = arith.constant 0 : index
    %1 = vector.load %arg2[%c0_1, %c0_2] : memref<128x512xf32, #tpu.memory_space<vmem>>, vector<128x512xf32>
    %cst = arith.constant dense<0.000000e+00> : vector<8x512xf32>
    %2 = tpu.matmul %0, %1, %cst {dimension_numbers = #tpu.dot_dimension_numbers<[1], [0], [0], [1], [0, 0, 1, 1], [], []>} : vector<8x128xf32>, vector<128x512xf32>, vector<8x512xf32> -> vector<8x512xf32>
    %c0_3 = arith.constant 0 : index
    %c0_4 = arith.constant 0 : index
    %3 = vector.load %arg3[%c0_3, %c0_4] : memref<1x512xf32, #tpu.memory_space<vmem>>, vector<1x512xf32>
    %4 = vector.broadcast %3 : vector<1x512xf32> to vector<8x512xf32>
    %5 = arith.addf %2, %4 : vector<8x512xf32>
    %cst_5 = arith.constant 0.000000e+00 : f32
    %6 = vector.broadcast %cst_5 : f32 to vector<8x512xf32>
    %7 = arith.maximumf %5, %6 : vector<8x512xf32>
    %c0_6 = arith.constant 0 : index
    %c0_7 = arith.constant 0 : index
    %8 = vector.load %arg4[%c0_6, %c0_7] : memref<512x128xf32, #tpu.memory_space<vmem>>, vector<512x128xf32>
    %cst_8 = arith.constant dense<0.000000e+00> : vector<8x128xf32>
    %9 = tpu.matmul %7, %8, %cst_8 {dimension_numbers = #tpu.dot_dimension_numbers<[1], [0], [0], [1], [0, 0, 1, 1], [], []>} : vector<8x512xf32>, vector<512x128xf32>, vector<8x128xf32> -> vector<8x128xf32>
    %c0_9 = arith.constant 0 : index
    %c0_10 = arith.constant 0 : index
    %10 = vector.load %arg5[%c0_9, %c0_10] : memref<1x128xf32, #tpu.memory_space<vmem>>, vector<1x128xf32>
    %11 = vector.broadcast %10 : vector<1x128xf32> to vector<8x128xf32>
    %12 = arith.addf %9, %11 : vector<8x128xf32>
    %cst_11 = arith.constant 0.000000e+00 : f32
    %13 = vector.broadcast %cst_11 : f32 to vector<8x128xf32>
    %14 = arith.maximumf %12, %13 : vector<8x128xf32>
    %c0_12 = arith.constant 0 : index
    %c0_13 = arith.constant 0 : index
    %15 = vector.load %arg6[%c0_12, %c0_13] : memref<8x128xf32, #tpu.memory_space<vmem>>, vector<8x128xf32>
    tpu.vector_store %arg6[%c0_12, %c0_13], %14 {strides = array<i32>} : memref<8x128xf32, #tpu.memory_space<vmem>>, vector<8x128xf32>,
    return
  }
  func.func @transform_0(%arg0: i32) -> (i32, i32) {
    %c0_i32 = arith.constant 0 : i32
    %c0_i32_0 = arith.constant 0 : i32
    return %arg0, %c0_i32 : i32, i32
  }
  func.func @transform_1(%arg0: i32) -> (i32, i32) {
    %c0_i32 = arith.constant 0 : i32
    %c0_i32_0 = arith.constant 0 : i32
    %c0_i32_1 = arith.constant 0 : i32
    return %c0_i32, %c0_i32_0 : i32, i32
  }
  func.func @transform_2(%arg0: i32) -> (i32, i32) {
    %c0_i32 = arith.constant 0 : i32
    %c0_i32_0 = arith.constant 0 : i32
    %c0_i32_1 = arith.constant 0 : i32
    return %c0_i32, %c0_i32_0 : i32, i32
  }
  func.func @transform_3(%arg0: i32) -> (i32, i32) {
    %c0_i32 = arith.constant 0 : i32
    %c0_i32_0 = arith.constant 0 : i32
    %c0_i32_1 = arith.constant 0 : i32
    return %c0_i32, %c0_i32_0 : i32, i32
  }
  func.func @transform_4(%arg0: i32) -> (i32, i32) {
    %c0_i32 = arith.constant 0 : i32
    %c0_i32_0 = arith.constant 0 : i32
    %c0_i32_1 = arith.constant 0 : i32
    return %c0_i32, %c0_i32_0 : i32, i32
  }
  func.func @transform_5(%arg0: i32) -> (i32, i32) {
    %c0_i32 = arith.constant 0 : i32
    %c0_i32_0 = arith.constant 0 : i32
    return %arg0, %c0_i32 : i32, i32
  }
}

</mosaic_0001>

<bundles_post_ra>
// kernel: tpu_custom_call.1
= control target key start
LH: loop header
LB: loop body
LE: loop exit
PB: predicated region body
PF: predicated region fallthrough
CT: control target
= control target key end

     0   :  { %10 = vsyncpa [#allocation3], 0  ;;  %s1009_s0 = inlined_call_operand.hbm [shape: f32[8,128], index: 0, kind: input, shape index: {}]   ;;  %s1010_s1 = inlined_call_operand.hbm [shape: f32[128,512], index: 1, kind: input, shape index: {}]   ;;  %s1011_s2 = inlined_call_operand.hbm [shape: f32[1,512], index: 2, kind: input, shape index: {}]   ;;  %s1012_s3 = inlined_call_operand.hbm [shape: f32[512,128], index: 3, kind: input, shape index: {}]   ;;  %s1013_s4 = inlined_call_operand.hbm [shape: f32[1,128], index: 4, kind: input, shape index: {}]   ;;  %s1014_s5 = inlined_call_operand.hbm [shape: f32[8,128], index: 5, kind: output, shape index: {}]  }
   0x1   :  { %11 = vsyncpa [#allocation6], 0 }
   0x2   :  { %12 = vsyncpa [#allocation9], 0 }
   0x3   :  { %13 = vsyncpa [#allocation4], 0  ;;  %s896_s18 = smov [#allocation5]   ;;  %s756_s22 = scalar_lea.hbm %s1010_s1, 8192 }
   0x4   :  { %s29_s19 = sshll.u32 %s896_s18, 4  ;;  %p757_p0 = scmp.ne.s32.totalorder %s1010_s1, %s756_s22  ;;  %s30_s19 = int_to_ptr.vmem [resolvable:$true] %s29_s19 }
   0x5   :  { %p760_p1 = scmp.lt.u32.totalorder %s756_s22, %s1010_s1 }
   0x7   :  { %p762_p2 = pnand %p760_p1, %p757_p0 }
   0x9   :  { %765 = shalt.err (!%p762_p2)
}
   0xa   :  { %s766_s27 = scalar_lea.vmem %s30_s19, 8192  ;;  %p771_p4 = scmp.lt.s32.totalorder %s30_s19, %s30_s19 }
   0xb   :  { %p767_p3 = scmp.ne.s32.totalorder %s30_s19, %s766_s27  ;;  %p772_p5 = scmp.lt.s32.totalorder %s766_s27, %s766_s27 }
   0xd   :  { %p773_p6 = por %p772_p5, %p771_p4 }
   0xf   :  { %p774_p7 = pnand %p773_p6, %p767_p3 }
  0x11   :  { %777 = shalt.err (!%p774_p7)
}
  0x12   :  { %s897_s28 = smov 512   ;;  %s898_s29 = smov 32  }
  0x13   :  { %35 = dma.hbm_to_vmem [thread:$0]  %s1010_s1, 8192, %s30_s19, [#allocation6], %s897_s28, %s897_s28, %s898_s29  }
  0x14   :  { %s899_s7 = smov [#allocation8]   ;;  %s778_s11 = scalar_lea.hbm %s1012_s3, 8192 }
  0x15   :  { %s51_s8 = sshll.u32 %s899_s7, 4  ;;  %p779_p8 = scmp.ne.s32.totalorder %s1012_s3, %s778_s11  ;;  %s52_s8 = int_to_ptr.vmem [resolvable:$true] %s51_s8 }
  0x16   :  { %p782_p9 = scmp.lt.u32.totalorder %s778_s11, %s1012_s3 }
  0x18   :  { %p784_p10 = pnand %p782_p9, %p779_p8 }
  0x1a   :  { %787 = shalt.err (!%p784_p10)
}
  0x1b   :  { %s788_s16 = scalar_lea.vmem %s52_s8, 8192  ;;  %p793_p12 = scmp.lt.s32.totalorder %s52_s8, %s52_s8 }
  0x1c   :  { %p789_p11 = scmp.ne.s32.totalorder %s52_s8, %s788_s16  ;;  %p794_p13 = scmp.lt.s32.totalorder %s788_s16, %s788_s16 }
  0x1e   :  { %p795_p0 = por %p794_p13, %p793_p12 }
  0x20   :  { %p796_p1 = pnand %p795_p0, %p789_p11 }
  0x22   :  { %799 = shalt.err (!%p796_p1)
}
  0x23   :  { %s900_s1 = smov 128   ;;  %s901_s17 = smov 8  }
  0x24   :  { %57 = dma.hbm_to_vmem [thread:$0]  %s1012_s3, 8192, %s52_s8, [#allocation9], %s900_s1, %s900_s1, %s901_s17  }
  0x25   :  { %s902_s20 = smov [#allocation2]   ;;  %s903_s22 = smov [#allocation7]  }
  0x26   :  { %s20_s21 = sshll.u32 %s902_s20, 4  ;;  %s42_s23 = sshll.u32 %s903_s22, 4  ;;  %s21_s21 = int_to_ptr.vmem [resolvable:$true] %s20_s21  ;;  %s43_s23 = int_to_ptr.vmem [resolvable:$true] %s42_s23 }
  0x27   :  { %s800_s26 = scalar_lea.hbm %s1009_s0, 128 }
  0x28   :  { %p801_p2 = scmp.ne.s32.totalorder %s1009_s0, %s800_s26  ;;  %p804_p3 = scmp.lt.u32.totalorder %s800_s26, %s1009_s0 }
  0x2a   :  { %p806_p4 = pnand %p804_p3, %p801_p2 }
  0x2c   :  { %809 = shalt.err (!%p806_p4)
}
  0x2d   :  { %s810_s3 = scalar_lea.vmem %s21_s21, 128  ;;  %p815_p6 = scmp.lt.s32.totalorder %s21_s21, %s21_s21 }
  0x2e   :  { %p811_p5 = scmp.ne.s32.totalorder %s21_s21, %s810_s3  ;;  %p816_p7 = scmp.lt.s32.totalorder %s810_s3, %s810_s3 }
  0x30   :  { %p817_p8 = por %p816_p7, %p815_p6 }
  0x32   :  { %p818_p9 = pnand %p817_p8, %p811_p5 }
  0x34   :  { %821 = shalt.err (!%p818_p9)
}
  0x35   :  { %23 = dma.hbm_to_vmem [thread:$0]  %s1009_s0, 128, %s21_s21, [#allocation3]  }
  0x36   :  { %s822_s10 = scalar_lea.hbm %s1011_s2, 64 }
  0x37   :  { %p823_p10 = scmp.ne.s32.totalorder %s1011_s2, %s822_s10  ;;  %p826_p11 = scmp.lt.u32.totalorder %s822_s10, %s1011_s2 }
  0x39   :  { %p828_p12 = pnand %p826_p11, %p823_p10 }
  0x3b   :  { %831 = shalt.err (!%p828_p12)
}
  0x3c   :  { %s832_s15 = scalar_lea.vmem %s43_s23, 64  ;;  %p837_p0 = scmp.lt.s32.totalorder %s43_s23, %s43_s23 }
  0x3d   :  { %p833_p13 = scmp.ne.s32.totalorder %s43_s23, %s832_s15  ;;  %p838_p1 = scmp.lt.s32.totalorder %s832_s15, %s832_s15 }
  0x3f   :  { %p839_p2 = por %p838_p1, %p837_p0 }
  0x41   :  { %p840_p3 = pnand %p839_p2, %p833_p13 }
  0x43   :  { %843 = shalt.err (!%p840_p3)
}
  0x44   :  { %45 = dma.hbm_to_vmem [thread:$0]  %s1011_s2, 64, %s43_s23, [#allocation6]  }
  0x45   :  { %s904_s1 = smov [#allocation10]   ;;  %s844_s20 = scalar_lea.hbm %s1013_s4, 16 }
  0x46   :  { %s64_s17 = sshll.u32 %s904_s1, 4  ;;  %p845_p4 = scmp.ne.s32.totalorder %s1013_s4, %s844_s20  ;;  %s65_s17 = int_to_ptr.vmem [resolvable:$true] %s64_s17 }
  0x47   :  { %p848_p5 = scmp.lt.u32.totalorder %s844_s20, %s1013_s4 }
  0x49   :  { %p850_p6 = pnand %p848_p5, %p845_p4 }
  0x4b   :  { %853 = shalt.err (!%p850_p6)
}
  0x4c   :  { %s854_s26 = scalar_lea.vmem %s65_s17, 16  ;;  %s858_s2 = scalar_lea.vmem %s65_s17, 32 }
  0x4d   :  { %p855_p7 = scmp.ne.s32.totalorder %s65_s17, %s854_s26  ;;  %p859_p8 = scmp.lt.s32.totalorder %s65_s17, %s65_s17 }
  0x4e   :  { %p860_p9 = scmp.lt.s32.totalorder %s858_s2, %s854_s26 }
  0x50   :  { %p861_p10 = por %p860_p9, %p859_p8 }
  0x52   :  { %p862_p11 = pnand %p861_p10, %p855_p7 }
  0x54   :  { %865 = shalt.err (!%p862_p11)
}
  0x55   :  { %67 = dma.hbm_to_vmem [thread:$0]  %s1013_s4, 16, %s65_s17, [#allocation9]  }
  0x56   :  { %888 = dma.done.wait [#allocation3], 128  }
  0x57   :  { %889 = vsyncadd [#allocation3], 4294967168 }
  0x58   :  { %890 = dma.done.wait [#allocation6], 8256  }
  0x59   :  { %891 = vsyncadd [#allocation6], 4294959040 }
  0x5a   :  { %892 = dma.done.wait [#allocation9], 8208  }
  0x5b   :  { %893 = vsyncadd [#allocation9], 4294959088  ;;  %v905_v0 = vmov 0.0   ;;  %v85_v1 = vld [vmem:[#allocation5 + $0x8] sm:$0xff]  ;;  %v87_v3 = vld [vmem:[#allocation5 + $0x18] sm:$0xff]  ;;  %s906_s4 = smov [#allocation11]  }
  0x5c   :  { %234 = vmatprep.mubr.f32.mxu0 %v905_v0  ;;  %305 = vmatprep.mubr.f32.mxu1 %v905_v0  ;;  %v89_v2 = vld [vmem:[#allocation5 + $0x28] sm:$0xff]  ;;  %v91_v5 = vld [vmem:[#allocation5 + $0x38] sm:$0xff]  ;;  %v84_v6 = vld [vmem:[#allocation5] sm:$0xff]  ;;  %s535_s28 = sshll.u32 %s906_s4, 4  ;;  %s536_s28 = int_to_ptr.vmem [resolvable:$true] %s535_s28 }
  0x5d   :  { %v617_v4 = vpack.c.bf16 %v89_v2, %v85_v1  ;;  %v88_v7 = vld [vmem:[#allocation5 + $0x20] sm:$0xff]  ;;  %v649_v8 = vpack.c.bf16 %v91_v5, %v87_v3  ;;  %v86_v10 = vld [vmem:[#allocation5 + $0x10] sm:$0xff]  ;;  %v93_v12 = vld [vmem:[#allocation5 + $0x48] sm:$0xff]  ;;  %s866_s29 = scalar_lea.vmem %s536_s28, 128  ;;  %p871_p13 = scmp.lt.s32.totalorder %s536_s28, %s536_s28 }
  0x5e   :  { %v619_v9 = vpack.c.bf16 %v88_v7, %v84_v6  ;;  %v90_v11 = vld [vmem:[#allocation5 + $0x30] sm:$0xff]  ;;  %v97_v14 = vld [vmem:[#allocation5 + $0x68] sm:$0xff]  ;;  %v95_v15 = vld [vmem:[#allocation5 + $0x58] sm:$0xff]  ;;  %p867_p12 = scmp.ne.s32.totalorder %s536_s28, %s866_s29  ;;  %p872_p0 = scmp.lt.s32.totalorder %s866_s29, %s866_s29 }
  0x5f   :  { %618 = vmatprep.subr.bf16.mxu0 %v617_v4  ;;  %v651_v13 = vpack.c.bf16 %v90_v11, %v86_v10  ;;  %v99_v16 = vld [vmem:[#allocation5 + $0x78] sm:$0xff]  ;;  %650 = vmatprep.subr.bf16.mxu1 %v649_v8  ;;  %v621_v17 = vpack.c.bf16 %v97_v14, %v93_v12  ;;  %v92_v19 = vld [vmem:[#allocation5 + $0x40] sm:$0xff]  ;;  %v94_v21 = vld [vmem:[#allocation5 + $0x50] sm:$0xff] }
  0x60   :  { %620 = vmatpush1.bf16.msra.mxu0 %v619_v9  ;;  %v653_v18 = vpack.c.bf16 %v99_v16, %v95_v15  ;;  %v96_v20 = vld [vmem:[#allocation5 + $0x60] sm:$0xff]  ;;  %v98_v23 = vld [vmem:[#allocation5 + $0x70] sm:$0xff]  ;;  %v101_v24 = vld [vmem:[#allocation5 + $0x88] sm:$0xff]  ;;  %p873_p1 = por %p872_p0, %p871_p13 }
  0x61   :  { %652 = vmatpush1.bf16.msra.mxu1 %v651_v13  ;;  %v623_v22 = vpack.c.bf16 %v96_v20, %v92_v19  ;;  %v105_v25 = vld [vmem:[#allocation5 + $0xa8] sm:$0xff]  ;;  %622 = vmatprep.subr.bf16.mxu0 %v621_v17  ;;  %v655_v26 = vpack.c.bf16 %v98_v23, %v94_v21  ;;  %v103_v28 = vld [vmem:[#allocation5 + $0x98] sm:$0xff]  ;;  %v100_v30 = vld [vmem:[#allocation5 + $0x80] sm:$0xff] }
  0x62   :  { %654 = vmatprep.subr.bf16.mxu1 %v653_v18  ;;  %v625_v27 = vpack.c.bf16 %v105_v25, %v101_v24  ;;  %v107_v29 = vld [vmem:[#allocation5 + $0xb8] sm:$0xff]  ;;  %v104_v32 = vld [vmem:[#allocation5 + $0xa0] sm:$0xff]  ;;  %v102_v33 = vld [vmem:[#allocation5 + $0x90] sm:$0xff]  ;;  %p874_p2 = pnand %p873_p1, %p867_p12 }
  0x63   :  { %v657_v31 = vpack.c.bf16 %v107_v29, %v103_v28  ;;  %v106_v34 = vld [vmem:[#allocation5 + $0xb0] sm:$0xff]  ;;  %v627_v35 = vpack.c.bf16 %v104_v32, %v100_v30  ;;  %v109_v36 = vld [vmem:[#allocation5 + $0xc8] sm:$0xff]  ;;  %v111_v38 = vld [vmem:[#allocation5 + $0xd8] sm:$0xff] }
  0x64   :  { %624 = vmatpush1.bf16.msra.mxu0 %v623_v22  ;;  %v113_v37 = vld [vmem:[#allocation5 + $0xe8] sm:$0xff]  ;;  %v659_v39 = vpack.c.bf16 %v106_v34, %v102_v33  ;;  %v115_v41 = vld [vmem:[#allocation5 + $0xf8] sm:$0xff]  ;;  %v108_v42 = vld [vmem:[#allocation5 + $0xc0] sm:$0xff] }
  0x65   :  { %656 = vmatpush1.bf16.msra.mxu1 %v655_v26  ;;  %626 = vmatprep.subr.bf16.mxu0 %v625_v27  ;;  %v629_v40 = vpack.c.bf16 %v113_v37, %v109_v36  ;;  %v112_v43 = vld [vmem:[#allocation5 + $0xe0] sm:$0xff]  ;;  %v661_v44 = vpack.c.bf16 %v115_v41, %v111_v38  ;;  %v110_v45 = vld [vmem:[#allocation5 + $0xd0] sm:$0xff]  ;;  %v117_v47 = vld [vmem:[#allocation5 + $0x108] sm:$0xff] }
  0x66   :  { %658 = vmatprep.subr.bf16.mxu1 %v657_v31  ;;  %v114_v46 = vld [vmem:[#allocation5 + $0xf0] sm:$0xff]  ;;  %v121_v48 = vld [vmem:[#allocation5 + $0x128] sm:$0xff]  ;;  %v119_v49 = vld [vmem:[#allocation5 + $0x118] sm:$0xff]  ;;  %v631_v51 = vpack.c.bf16 %v112_v43, %v108_v42 }
  0x67   :  { %v123_v50 = vld [vmem:[#allocation5 + $0x138] sm:$0xff]  ;;  %v663_v52 = vpack.c.bf16 %v114_v46, %v110_v45  ;;  %v633_v53 = vpack.c.bf16 %v121_v48, %v117_v47  ;;  %v116_v54 = vld [vmem:[#allocation5 + $0x100] sm:$0xff]  ;;  %v118_v56 = vld [vmem:[#allocation5 + $0x110] sm:$0xff] }
  0x68   :  { %628 = vmatpush1.bf16.msra.mxu0 %v627_v35  ;;  %v120_v55 = vld [vmem:[#allocation5 + $0x120] sm:$0xff]  ;;  %v665_v57 = vpack.c.bf16 %v123_v50, %v119_v49  ;;  %v122_v58 = vld [vmem:[#allocation5 + $0x130] sm:$0xff]  ;;  %v125_v59 = vld [vmem:[#allocation5 + $0x148] sm:$0xff] }
  0x69   :  { %660 = vmatpush1.bf16.msra.mxu1 %v659_v39  ;;  %630 = vmatprep.subr.bf16.mxu0 %v629_v40  ;;  %v129_v60 = vld [vmem:[#allocation5 + $0x168] sm:$0xff]  ;;  %v127_v61 = vld [vmem:[#allocation5 + $0x158] sm:$0xff]  ;;  %v635_v63 = vpack.c.bf16 %v120_v55, %v116_v54  ;;  %v667_v0 = vpack.c.bf16 %v122_v58, %v118_v56  ;;  %v124_v2 = vld [vmem:[#allocation5 + $0x140] sm:$0xff] }
  0x6a   :  { %662 = vmatprep.subr.bf16.mxu1 %v661_v44  ;;  %v131_v62 = vld [vmem:[#allocation5 + $0x178] sm:$0xff]  ;;  %v637_v1 = vpack.c.bf16 %v129_v60, %v125_v59  ;;  %v128_v3 = vld [vmem:[#allocation5 + $0x160] sm:$0xff]  ;;  %v126_v4 = vld [vmem:[#allocation5 + $0x150] sm:$0xff] }
  0x6b   :  { %v669_v5 = vpack.c.bf16 %v131_v62, %v127_v61  ;;  %v130_v6 = vld [vmem:[#allocation5 + $0x170] sm:$0xff]  ;;  %v133_v7 = vld [vmem:[#allocation5 + $0x188] sm:$0xff]  ;;  %v135_v9 = vld [vmem:[#allocation5 + $0x198] sm:$0xff]  ;;  %v639_v11 = vpack.c.bf16 %v128_v3, %v124_v2 }
  0x6c   :  { %632 = vmatpush1.bf16.msra.mxu0 %v631_v51  ;;  %v137_v8 = vld [vmem:[#allocation5 + $0x1a8] sm:$0xff]  ;;  %v139_v10 = vld [vmem:[#allocation5 + $0x1b8] sm:$0xff]  ;;  %v671_v12 = vpack.c.bf16 %v130_v6, %v126_v4  ;;  %v132_v14 = vld [vmem:[#allocation5 + $0x180] sm:$0xff] }
  0x6d   :  { %664 = vmatpush1.bf16.msra.mxu1 %v663_v52  ;;  %634 = vmatprep.subr.bf16.mxu0 %v633_v53  ;;  %v641_v13 = vpack.c.bf16 %v137_v8, %v133_v7  ;;  %v136_v15 = vld [vmem:[#allocation5 + $0x1a0] sm:$0xff]  ;;  %v134_v16 = vld [vmem:[#allocation5 + $0x190] sm:$0xff]  ;;  %v673_v17 = vpack.c.bf16 %v139_v10, %v135_v9  ;;  %v141_v19 = vld [vmem:[#allocation5 + $0x1c8] sm:$0xff] }
  0x6e   :  { %666 = vmatprep.subr.bf16.mxu1 %v665_v57  ;;  %v138_v18 = vld [vmem:[#allocation5 + $0x1b0] sm:$0xff]  ;;  %v145_v20 = vld [vmem:[#allocation5 + $0x1e8] sm:$0xff]  ;;  %v143_v21 = vld [vmem:[#allocation5 + $0x1d8] sm:$0xff]  ;;  %v643_v23 = vpack.c.bf16 %v136_v15, %v132_v14 }
  0x6f   :  { %v147_v22 = vld [vmem:[#allocation5 + $0x1f8] sm:$0xff]  ;;  %v675_v24 = vpack.c.bf16 %v138_v18, %v134_v16  ;;  %v645_v25 = vpack.c.bf16 %v145_v20, %v141_v19  ;;  %v140_v26 = vld [vmem:[#allocation5 + $0x1c0] sm:$0xff]  ;;  %v142_v28 = vld [vmem:[#allocation5 + $0x1d0] sm:$0xff] }
  0x70   :  { %636 = vmatpush1.bf16.msra.mxu0 %v635_v63  ;;  %v144_v27 = vld [vmem:[#allocation5 + $0x1e0] sm:$0xff]  ;;  %v677_v29 = vpack.c.bf16 %v147_v22, %v143_v21  ;;  %v146_v30 = vld [vmem:[#allocation5 + $0x1f0] sm:$0xff]  ;;  %v83_v47 = vld [vmem:[#allocation2] sm:$0xff] }
  0x71   :  { %668 = vmatpush1.bf16.msra.mxu1 %v667_v0  ;;  %638 = vmatprep.subr.bf16.mxu0 %v637_v1  ;;  %v332_v31 = vld [vmem:[#allocation8 + $0x80] sm:$0xff]  ;;  %v333_v32 = vld [vmem:[#allocation8 + $0x88] sm:$0xff]  ;;  %v647_v35 = vpack.c.bf16 %v144_v27, %v140_v26  ;;  %v679_v36 = vpack.c.bf16 %v146_v30, %v142_v28  ;;  %v334_v43 = vld [vmem:[#allocation8 + $0x90] sm:$0xff] }
  0x72   :  { %670 = vmatprep.subr.bf16.mxu1 %v669_v5  ;;  %v364_v33 = vld [vmem:[#allocation8 + $0x180] sm:$0xff]  ;;  %v365_v34 = vld [vmem:[#allocation8 + $0x188] sm:$0xff]  ;;  %v681_v37 = vpack.c.bf16 %v333_v32, %v332_v31  ;;  %v335_v44 = vld [vmem:[#allocation8 + $0x98] sm:$0xff] }
  0x73   :  { %v316_v38 = vld [vmem:[#allocation8] sm:$0xff]  ;;  %v317_v39 = vld [vmem:[#allocation8 + $0x8] sm:$0xff]  ;;  %v713_v41 = vpack.c.bf16 %v365_v34, %v364_v33  ;;  %v366_v45 = vld [vmem:[#allocation8 + $0x190] sm:$0xff]  ;;  %v685_v50 = vpack.c.bf16 %v335_v44, %v334_v43 }
  0x74   :  { %640 = vmatpush1.bf16.msra.mxu0 %v639_v11  ;;  %v348_v40 = vld [vmem:[#allocation8 + $0x100] sm:$0xff]  ;;  %v349_v42 = vld [vmem:[#allocation8 + $0x108] sm:$0xff]  ;;  %v367_v46 = vld [vmem:[#allocation8 + $0x198] sm:$0xff]  ;;  %v683_v48 = vpack.c.bf16 %v317_v39, %v316_v38 }
  0x75   :  { %672 = vmatpush1.bf16.msra.mxu1 %v671_v12  ;;  %642 = vmatprep.subr.bf16.mxu0 %v641_v13  ;;  %v715_v49 = vpack.c.bf16 %v349_v42, %v348_v40  ;;  %v318_v51 = vld [vmem:[#allocation8 + $0x10] sm:$0xff]  ;;  %v319_v52 = vld [vmem:[#allocation8 + $0x18] sm:$0xff]  ;;  %v717_v54 = vpack.c.bf16 %v367_v46, %v366_v45  ;;  %v336_v56 = vld [vmem:[#allocation8 + $0xa0] sm:$0xff] }
  0x76   :  { %674 = vmatprep.subr.bf16.mxu1 %v673_v17  ;;  %v350_v53 = vld [vmem:[#allocation8 + $0x110] sm:$0xff]  ;;  %v351_v55 = vld [vmem:[#allocation8 + $0x118] sm:$0xff]  ;;  %v337_v57 = vld [vmem:[#allocation8 + $0xa8] sm:$0xff]  ;;  %v687_v60 = vpack.c.bf16 %v319_v52, %v318_v51 }
  0x77   :  { %v368_v58 = vld [vmem:[#allocation8 + $0x1a0] sm:$0xff]  ;;  %v369_v59 = vld [vmem:[#allocation8 + $0x1a8] sm:$0xff]  ;;  %v719_v61 = vpack.c.bf16 %v351_v55, %v350_v53  ;;  %v689_v62 = vpack.c.bf16 %v337_v57, %v336_v56  ;;  %v338_v4 = vld [vmem:[#allocation8 + $0xb0] sm:$0xff] }
  0x78   :  { %644 = vmatpush1.bf16.msra.mxu0 %v643_v23  ;;  %v320_v63 = vld [vmem:[#allocation8 + $0x20] sm:$0xff]  ;;  %v321_v0 = vld [vmem:[#allocation8 + $0x28] sm:$0xff]  ;;  %v721_v2 = vpack.c.bf16 %v369_v59, %v368_v58  ;;  %v339_v5 = vld [vmem:[#allocation8 + $0xb8] sm:$0xff] }
  0x79   :  { %676 = vmatpush1.bf16.msra.mxu1 %v675_v24  ;;  %646 = vmatprep.subr.bf16.mxu0 %v645_v25  ;;  %v352_v1 = vld [vmem:[#allocation8 + $0x120] sm:$0xff]  ;;  %v353_v3 = vld [vmem:[#allocation8 + $0x128] sm:$0xff]  ;;  %v370_v6 = vld [vmem:[#allocation8 + $0x1b0] sm:$0xff]  ;;  %v691_v8 = vpack.c.bf16 %v321_v0, %v320_v63  ;;  %v693_v10 = vpack.c.bf16 %v339_v5, %v338_v4 }
  0x7a   :  { %678 = vmatprep.subr.bf16.mxu1 %v677_v29  ;;  %v371_v7 = vld [vmem:[#allocation8 + $0x1b8] sm:$0xff]  ;;  %v723_v9 = vpack.c.bf16 %v353_v3, %v352_v1  ;;  %v322_v11 = vld [vmem:[#allocation8 + $0x30] sm:$0xff]  ;;  %v340_v16 = vld [vmem:[#allocation8 + $0xc0] sm:$0xff] }
  0x7b   :  { %v323_v12 = vld [vmem:[#allocation8 + $0x38] sm:$0xff]  ;;  %v354_v13 = vld [vmem:[#allocation8 + $0x130] sm:$0xff]  ;;  %v725_v14 = vpack.c.bf16 %v371_v7, %v370_v6  ;;  %v341_v17 = vld [vmem:[#allocation8 + $0xc8] sm:$0xff] }
  0x7c   :  { %648 = vmatpush1.bf16.msra.mxu0 %v647_v35  ;;  %v355_v15 = vld [vmem:[#allocation8 + $0x138] sm:$0xff]  ;;  %v372_v18 = vld [vmem:[#allocation8 + $0x1c0] sm:$0xff]  ;;  %v373_v19 = vld [vmem:[#allocation8 + $0x1c8] sm:$0xff]  ;;  %v695_v20 = vpack.c.bf16 %v323_v12, %v322_v11  ;;  %v697_v22 = vpack.c.bf16 %v341_v17, %v340_v16 }
  0x7d   :  { %680 = vmatpush1.bf16.msra.mxu1 %v679_v36  ;;  %682 = vmatprep.subr.bf16.mxu0 %v681_v37  ;;  %v727_v21 = vpack.c.bf16 %v355_v15, %v354_v13  ;;  %v324_v23 = vld [vmem:[#allocation8 + $0x40] sm:$0xff]  ;;  %v325_v24 = vld [vmem:[#allocation8 + $0x48] sm:$0xff]  ;;  %v729_v26 = vpack.c.bf16 %v373_v19, %v372_v18  ;;  %v342_v28 = vld [vmem:[#allocation8 + $0xd0] sm:$0xff] }
  0x7e   :  { %714 = vmatprep.subr.bf16.mxu1 %v713_v41  ;;  %v356_v25 = vld [vmem:[#allocation8 + $0x140] sm:$0xff]  ;;  %v357_v27 = vld [vmem:[#allocation8 + $0x148] sm:$0xff]  ;;  %v343_v29 = vld [vmem:[#allocation8 + $0xd8] sm:$0xff]  ;;  %v699_v32 = vpack.c.bf16 %v325_v24, %v324_v23 }
  0x7f   :  { %235 = vmatmul.mubr.f32.vlgmr.msra.gmra.mrb[0].mxu0 %v83_v47  ;;  %v374_v30 = vld [vmem:[#allocation8 + $0x1d0] sm:$0xff]  ;;  %v375_v31 = vld [vmem:[#allocation8 + $0x1d8] sm:$0xff]  ;;  %v731_v33 = vpack.c.bf16 %v357_v27, %v356_v25  ;;  %v701_v34 = vpack.c.bf16 %v343_v29, %v342_v28  ;;  %v344_v40 = vld [vmem:[#allocation8 + $0xe0] sm:$0xff] }
  0x80   :  { %306 = vmatmul.mubr.f32.vlgmr.msra.gmra.mrb[0].mxu1 %v83_v47  ;;  %684 = vmatpush3.bf16.msra.mxu0 %v683_v48  ;;  %v326_v35 = vld [vmem:[#allocation8 + $0x50] sm:$0xff]  ;;  %v327_v36 = vld [vmem:[#allocation8 + $0x58] sm:$0xff]  ;;  %v733_v38 = vpack.c.bf16 %v375_v31, %v374_v30  ;;  %v345_v41 = vld [vmem:[#allocation8 + $0xe8] sm:$0xff] }
  0x81   :  { %716 = vmatpush3.bf16.msra.mxu1 %v715_v49  ;;  %686 = vmatprep.subr.bf16.mxu0 %v685_v50  ;;  %v358_v37 = vld [vmem:[#allocation8 + $0x150] sm:$0xff]  ;;  %v359_v39 = vld [vmem:[#allocation8 + $0x158] sm:$0xff]  ;;  %v376_v42 = vld [vmem:[#allocation8 + $0x1e0] sm:$0xff]  ;;  %v703_v44 = vpack.c.bf16 %v327_v36, %v326_v35  ;;  %v705_v46 = vpack.c.bf16 %v345_v41, %v344_v40 }
  0x82   :  { %718 = vmatprep.subr.bf16.mxu1 %v717_v54  ;;  %v377_v43 = vld [vmem:[#allocation8 + $0x1e8] sm:$0xff]  ;;  %v735_v45 = vpack.c.bf16 %v359_v39, %v358_v37  ;;  %v328_v48 = vld [vmem:[#allocation8 + $0x60] sm:$0xff]  ;;  %v346_v54 = vld [vmem:[#allocation8 + $0xf0] sm:$0xff] }
  0x83   :  { %v737_v47 = vpack.c.bf16 %v377_v43, %v376_v42  ;;  %v329_v49 = vld [vmem:[#allocation8 + $0x68] sm:$0xff]  ;;  %v360_v50 = vld [vmem:[#allocation8 + $0x160] sm:$0xff]  ;;  %v347_v55 = vld [vmem:[#allocation8 + $0xf8] sm:$0xff] }
  0x84   :  { %688 = vmatpush3.bf16.msra.mxu0 %v687_v60  ;;  %v707_v51 = vpack.c.bf16 %v329_v49, %v328_v48  ;;  %v361_v52 = vld [vmem:[#allocation8 + $0x168] sm:$0xff]  ;;  %v378_v56 = vld [vmem:[#allocation8 + $0x1f0] sm:$0xff]  ;;  %v709_v57 = vpack.c.bf16 %v347_v55, %v346_v54  ;;  %v379_v58 = vld [vmem:[#allocation8 + $0x1f8] sm:$0xff] }
  0x85   :  { %720 = vmatpush3.bf16.msra.mxu1 %v719_v61  ;;  %690 = vmatprep.subr.bf16.mxu0 %v689_v62  ;;  %v739_v53 = vpack.c.bf16 %v361_v52, %v360_v50  ;;  %v330_v59 = vld [vmem:[#allocation8 + $0x70] sm:$0xff]  ;;  %v331_v60 = vld [vmem:[#allocation8 + $0x78] sm:$0xff]  ;;  %v741_v61 = vpack.c.bf16 %v379_v58, %v378_v56  ;;  %v546_v27 = vld [vmem:[#allocation10] ss:$0 sm:$0xff] }
  0x86   :  { %722 = vmatprep.subr.bf16.mxu1 %v721_v2  ;;  %v711_v62 = vpack.c.bf16 %v331_v60, %v330_v59  ;;  %v362_v63 = vld [vmem:[#allocation8 + $0x170] sm:$0xff]  ;;  %v363_v0 = vld [vmem:[#allocation8 + $0x178] sm:$0xff]  ;;  %v150_v2 = vlaneseq }
  0x87   :  { %v743_v1 = vpack.c.bf16 %v363_v0, %v362_v63  ;;  %v148_v5 = vld [vmem:[#allocation7] sm:$0xf] }
  0x88   :  { %692 = vmatpush3.bf16.msra.mxu0 %v691_v8  ;;  %v151_v3 = vshrl.u32 %v150_v2, 7 }
  0x89   :  { %724 = vmatpush3.bf16.msra.mxu1 %v723_v9  ;;  %694 = vmatprep.subr.bf16.mxu0 %v693_v10 }
  0x8a   :  { %726 = vmatprep.subr.bf16.mxu1 %v725_v14  ;;  %v152_v4 = vsub.s32 0, %v151_v3  ;;  %v160_v6 = vsub.s32 2, %v151_v3  ;;  %v156_v7 = vsub.s32 1, %v151_v3  ;;  %v164_v8 = vsub.s32 3, %v151_v3 }
  0x8c   :  { %696 = vmatpush3.bf16.msra.mxu0 %v695_v20  ;;  %v153_v9 = vrot.slane %v148_v5, %v152_v4  ;;  %v161_v10 = vrot.slane %v148_v5, %v160_v6  ;;  %v157_v11 = vrot.slane %v148_v5, %v156_v7  ;;  %v165_v12 = vrot.slane %v148_v5, %v164_v8 }
  0x8d   :  { %728 = vmatpush3.bf16.msra.mxu1 %v727_v21  ;;  %698 = vmatprep.subr.bf16.mxu0 %v697_v22 }
  0x8e   :  { %730 = vmatprep.subr.bf16.mxu1 %v729_v26 }
  0x90   :  { %700 = vmatpush3.bf16.msra.mxu0 %v699_v32 }
  0x91   :  { %732 = vmatpush3.bf16.msra.mxu1 %v731_v33  ;;  %702 = vmatprep.subr.bf16.mxu0 %v701_v34 }
  0x92   :  { %734 = vmatprep.subr.bf16.mxu1 %v733_v38 }
  0x94   :  { %704 = vmatpush3.bf16.msra.mxu0 %v703_v44 }
  0x95   :  { %736 = vmatpush3.bf16.msra.mxu1 %v735_v45  ;;  %706 = vmatprep.subr.bf16.mxu0 %v705_v46 }
  0x96   :  { %738 = vmatprep.subr.bf16.mxu1 %v737_v47 }
  0x98   :  { %708 = vmatpush3.bf16.msra.mxu0 %v707_v51 }
  0x99   :  { %740 = vmatpush3.bf16.msra.mxu1 %v739_v53  ;;  %710 = vmatprep.subr.bf16.mxu0 %v709_v57 }
  0x9a   :  { %742 = vmatprep.subr.bf16.mxu1 %v741_v61 }
  0x9c   :  { %712 = vmatpush3.bf16.msra.mxu0 %v711_v62 }
  0x9d   :  { %744 = vmatpush3.bf16.msra.mxu1 %v743_v1 }
 0x152   :  { %v236_v13 = vpop.f32.mrb[0].mxu0 }
 0x153   :  { %v237_v14 = vadd.f32 %v236_v13, %v153_v9  ;;  %v307_v15 = vpop.f32.mrb[0].mxu1  ;;  %v238_v16 = vpop.f32.mrb[1].mxu0 }
 0x154   :  { %v308_v17 = vadd.f32 %v307_v15, %v161_v10  ;;  %v239_v18 = vadd.f32 %v238_v16, %v157_v11  ;;  %v309_v19 = vpop.f32.mrb[1].mxu1 }
 0x155   :  { %v310_v20 = vadd.f32 %v309_v19, %v165_v12  ;;  %v312_v23 = vmax.f32 %v237_v14, 0.0 }
 0x156   :  { %v314_v21 = vmax.f32 %v308_v17, 0.0  ;;  %v313_v22 = vmax.f32 %v239_v18, 0.0 }
 0x157   :  { %v315_v24 = vmax.f32 %v310_v20, 0.0 }
 0x158   :  { %451 = vmatprep.mubr.f32.mxu0 %v313_v22 }
 0x159   :  { %521 = vmatprep.mubr.f32.mxu1 %v315_v24  ;;  %452 = vmatmul.mubr.f32.vlgmr.msra.gmra.mrb[2].mxu0 %v312_v23 }
 0x15a   :  { %522 = vmatmul.mubr.f32.vlgmr.msra.gmra.mrb[2].mxu1 %v314_v21 }
 0x22c   :  { %v579_v25 = vpop.f32.mrb[2].mxu0 }
 0x22d   :  { %v614_v26 = vpop.f32.mrb[2].mxu1  ;;  %v580_v28 = vpop.f32.mrb[3].mxu0 }
 0x22e   :  { %v581_v29 = vadd.f32 %v580_v28, %v579_v25  ;;  %v615_v30 = vpop.f32.mrb[3].mxu1 }
 0x22f   :  { %v616_v31 = vadd.f32 %v615_v30, %v614_v26 }
 0x230   :  { %v454_v32 = vadd.f32 %v581_v29, %v546_v27 }
 0x232   :  { %v524_v33 = vadd.f32 %v616_v31, %v454_v32 }
 0x234   :  { %v527_v34 = vmax.f32 %v524_v33, 0.0 }
 0x236   :  { %528 = vst [vmem:[#allocation11] sm:$0xff] %v527_v34 }
 0x237   :  { %877 = shalt.err (!%p874_p2)
}
 0x238   :  { %s878_s6 = scalar_lea.hbm %s1014_s5, 128 }
 0x239   :  { %p879_p3 = scmp.ne.s32.totalorder %s1014_s5, %s878_s6  ;;  %p882_p4 = scmp.lt.u32.totalorder %s878_s6, %s1014_s5 }
 0x23b   :  { %p884_p5 = pnand %p882_p4, %p879_p3 }
 0x23d   :  { %887 = shalt.err (!%p884_p5)
}
 0x23e   :  { %538 = dma.vmem_to_hbm [thread:$0]  %s536_s28, 128, %s1014_s5, [#allocation4]  }
 0x23f   :  { %894 = dma.done.wait [#allocation4], 128  }
 0x240   :  { %895 = vsyncadd [#allocation4], 4294967168 }
 0x241   :  { %542 = vsyncpa [#allocation3], 1 }
 0x242   :  { %543 = vsyncpa [#allocation6], 1 }
 0x243   :  { %544 = vsyncpa [#allocation9], 1 }
 0x244   :  { %545 = vsyncpa [#allocation4], 1 }

</bundles_post_ra>
